<compile_context>
chip_gen: v5e
topology: v5e:2x2
jax: 0.10.0
libtpu: 0.0.40
codegen_flags: <defaults>
</compile_context>

<pallas_src>
import jax
import jax.numpy as jnp
import numpy as np
from jax import lax
from jax.experimental import pallas as pl
from jax.experimental.pallas import tpu as pltpu


def _device_vmem_bytes():
    try:
        return int(pltpu.get_tpu_info().vmem_capacity_bytes)
    except Exception:
        return 64 * 1024 * 1024  # conservative fallback (v7x per-core VMEM)


def unet_up_pallas(x, weight, bias, gamma, beta, running_mean, running_var,
                   eps=1e-5, out_dtype=jnp.float32,
                   kernel_out_dtype=jnp.bfloat16):
    """UnetUp forward (eval mode).

    x:      (N, Cin, H, W)  float32
    weight: (Cin, Cout, 4, 4)  ConvTranspose2d layout
    """
    N, Cin, H, W = x.shape
    Cout = weight.shape[1]
    Wp = W + 2                      # padded width == column stride per row
    Mp = H * Wp                     # matmul columns / image (2 garbage cols/row)
    Lp = (H + 3) * Wp               # flat padded image length (>= (H+2)*Wp + 2)
    K = Cin * 9                     # shared 3x3-window taps
    Ka = K + 1                      # + ones row carrying the folded shift
    Kp = ((Ka + 7) // 8) * 8        # pad K to the f32 sublane multiple
    Cq = 4 * Cout                   # 4 sub-pixel phases per output channel

    # ---- fold conv bias + BatchNorm (eval) into f32 scale / shift ----------
    eff_scale = gamma / jnp.sqrt(running_var + eps)          # (Cout,)
    eff_shift = (bias - running_mean) * eff_scale + beta     # (Cout,)

    # ---- phase-decomposed weights over the shared 3x3 window (f32) ---------
    # y[n,co,2u+py,2v+px] = sum_{ci,r,c} xpad[n,ci,u+r,v+c] * w[ci,co,3+py-2r,3+px-2c]
    t = np.arange(3)
    p = np.arange(2)
    kk = 3 + p[:, None] - 2 * t[None, :]                     # (phase, tap) -> k idx
    valid = (kk >= 0) & (kk <= 3)
    kk_safe = np.clip(kk, 0, 3)
    wg = weight[:, :, kk_safe[:, :, None, None], kk_safe[None, None, :, :]]
    # wg: (Cin, Cout, py, r, px, c); mask structurally-zero taps
    mask = jnp.asarray((valid[:, :, None, None] & valid[None, None, :, :])
                       .astype(np.float32))
    wg = wg * mask * eff_scale[None, :, None, None, None, None]
    # rows: co*4 + py*2 + px ; cols (tap-major): (r*3 + c)*Cin + ci
    Wt = wg.transpose(1, 2, 4, 3, 5, 0).reshape(Cq, K).astype(jnp.float32)
    shift_col = jnp.repeat(eff_shift, 4).reshape(Cq, 1).astype(jnp.float32)
    Wt = jnp.concatenate([Wt, shift_col], axis=1)            # fold shift (col K)
    Wt = jnp.pad(Wt, ((0, 0), (0, Kp - Ka)))                 # zero pad cols

    # ---- flat zero-padded image: one cheap pad of x, no 9x im2col in HBM ---
    xflat = jnp.pad(x.astype(jnp.float32),
                    ((0, 0), (0, 0), (1, 2), (1, 1))).reshape(N, Cin, Lp)

    tap_offsets = tuple(r * Wp + c for r in range(3) for c in range(3))

    # ---- kernel: fused im2col -> single (Cq,Kp)@(Kp,Mp) matmul -> ReLU ------
    def kernel(w_ref, x_ref, o_ref, a_ref):
        # Build the tap matrix in VMEM from 9 contiguous slices of the flat
        # padded image (im2col fused into the kernel; no HBM patch matrix).
        for tap, off in enumerate(tap_offsets):
            a_ref[tap * Cin:(tap + 1) * Cin, :] = x_ref[0, :, off:off + Mp]
        # constant ones row carries the folded bias/BatchNorm shift
        a_ref[K:K + 1, :] = jnp.ones((1, Mp), jnp.float32)
        if Kp > Ka:  # keep padded rows finite (matching weight cols are zero)
            a_ref[Ka:Kp, :] = jnp.zeros((Kp - Ka, Mp), jnp.float32)
        acc = jnp.dot(w_ref[...], a_ref[...],
                      preferred_element_type=jnp.float32)     # (Cq, Mp) f32
        o_ref[0] = jnp.maximum(acc, 0.0).astype(o_ref.dtype)  # ReLU; Dropout=id

    # ---- VMEM budgeting: footprint-derived limit, per-generation cap -------
    out_bytes = np.dtype(kernel_out_dtype).itemsize
    footprint = (2 * Cin * Lp * 4            # double-buffered input block
                 + 2 * Cq * Mp * out_bytes   # double-buffered output block
                 + 2 * Cq * Kp * 4           # resident fused weights
                 + Kp * Mp * 4)              # tap-matrix scratch
    vmem_cap = _device_vmem_bytes()
    if footprint > (vmem_cap * 3) // 4:
        raise ValueError(
            f"per-image working set ({footprint} B) exceeds the VMEM budget "
            f"({vmem_cap} B); add row-slab tiling for this problem size")
    vmem_limit = int(min((vmem_cap * 3) // 4,
                         max(4 * footprint, 32 * 1024 * 1024)))

    out_flat = pl.pallas_call(
        kernel,
        out_shape=jax.ShapeDtypeStruct((N, Cq, Mp), kernel_out_dtype),
        grid_spec=pltpu.PrefetchScalarGridSpec(
            num_scalar_prefetch=0,
            grid=(N,),                                         # one image / step
            in_specs=[
                pl.BlockSpec((Cq, Kp), lambda n: (0, 0)),      # resident weights
                pl.BlockSpec((1, Cin, Lp), lambda n: (n, 0, 0)),
            ],
            out_specs=pl.BlockSpec((1, Cq, Mp), lambda n: (n, 0, 0)),
            scratch_shapes=[pltpu.VMEM((Kp, Mp), jnp.float32)],
        ),
        compiler_params=pltpu.CompilerParams(
            dimension_semantics=("parallel",),                 # v7x megacore
            vmem_limit_bytes=vmem_limit),
    )(Wt, xflat)

    # ---- pixel shuffle (XLA, bf16 read): (co,py,px,u,v) -> NCHW, drop pad cols
    out = out_flat.reshape(N, Cout, 2, 2, H, Wp)[..., :W]
    out = out.transpose(0, 1, 4, 2, 5, 3).reshape(N, Cout, 2 * H, 2 * W)
    return out.astype(out_dtype)


# --------------------------------------------------------------------------
# Pure-JAX reference (for correctness check)
# --------------------------------------------------------------------------
def unet_up_reference(x, weight, bias, gamma, beta, running_mean, running_var,
                      eps=1e-5):
    Cout = weight.shape[1]
    w_eq = jnp.flip(weight, axis=(2, 3)).transpose(1, 0, 2, 3)   # OIHW
    y = lax.conv_general_dilated(
        x, w_eq, window_strides=(1, 1), padding=[(2, 2), (2, 2)],
        lhs_dilation=(2, 2),
        dimension_numbers=("NCHW", "OIHW", "NCHW"))
    y = y + bias.reshape(1, Cout, 1, 1)
    y = (y - running_mean.reshape(1, Cout, 1, 1)) / jnp.sqrt(
        running_var.reshape(1, Cout, 1, 1) + eps)
    y = y * gamma.reshape(1, Cout, 1, 1) + beta.reshape(1, Cout, 1, 1)
    return jnp.maximum(y, 0.0)  # Dropout: identity in eval mode


# --------------------------------------------------------------------------
if __name__ == "__main__":
    N, Cin, Cout, H, W = 2, 4, 8, 16, 16

    key = jax.random.PRNGKey(0)
    kx, kw, kb, kg, kbe, km, kv = jax.random.split(key, 7)

    x = jax.random.normal(kx, (N, Cin, H, W), jnp.float32)
    # ConvTranspose2d weight layout: (in_filters, out_filters, kH, kW)
    weight = jax.random.normal(kw, (Cin, Cout, 4, 4), jnp.float32) * 0.1
    bias = jax.random.normal(kb, (Cout,), jnp.float32) * 0.1
    gamma = 1.0 + 0.1 * jax.random.normal(kg, (Cout,), jnp.float32)
    beta = 0.1 * jax.random.normal(kbe, (Cout,), jnp.float32)
    running_mean = 0.1 * jax.random.normal(km, (Cout,), jnp.float32)
    running_var = 1.0 + 0.1 * jax.random.uniform(kv, (Cout,), jnp.float32)

    fn = jax.jit(unet_up_pallas)
    out = jax.block_until_ready(
        fn(x, weight, bias, gamma, beta, running_mean, running_var))

    ref = unet_up_reference(x, weight, bias, gamma, beta,
                            running_mean, running_var)
    assert out.shape == (N, Cout, 2 * H, 2 * W), out.shape
    # all-f32 compute; only the kernel output passes through bf16 once
    np.testing.assert_allclose(np.asarray(out), np.asarray(ref),
                               rtol=2e-2, atol=2e-2)

    print("KERNEL_OK")
</pallas_src>

<mosaic_0001>
module attributes {stable_mosaic.version = 11 : i64} {
  func.func @kernel(%arg0: i32, %arg1: memref<32x40xf32, #tpu.memory_space<vmem>>, %arg2: memref<1x4x342xf32, #tpu.memory_space<vmem>>, %arg3: memref<1x32x288xbf16, #tpu.memory_space<vmem>>, %arg4: memref<40x288xf32, #tpu.memory_space<vmem>>) attributes {dimension_semantics = [#tpu.dimension_semantics<parallel>], iteration_bounds = array<i64: 2>, scalar_prefetch = 0 : i64, scratch_operands = 1 : i64, tpu.core_type = #tpu.core_type<tc>, window_params = [{pipeline_mode = #tpu.pipeline_mode<synchronous>, transform_indices = @transform_0, window_bounds = array<i64: 32, 40>}, {transform_indices = @transform_1, window_bounds = array<i64: 1, 4, 342>}, {transform_indices = @transform_2, window_bounds = array<i64: 1, 32, 288>}]} {
    %c0 = arith.constant 0 : index
    %c0_0 = arith.constant 0 : index
    %c0_1 = arith.constant 0 : index
    %0 = vector.load %arg2[%c0, %c0_0, %c0_1] : memref<1x4x342xf32, #tpu.memory_space<vmem>>, vector<1x4x288xf32>
    %1 = vector.shape_cast %0 : vector<1x4x288xf32> to vector<4x288xf32>
    %c0_2 = arith.constant 0 : index
    %c0_3 = arith.constant 0 : index
    %2 = vector.load %arg4[%c0_2, %c0_3] : memref<40x288xf32, #tpu.memory_space<vmem>>, vector<4x288xf32>
    tpu.vector_store %arg4[%c0_2, %c0_3], %1 {strides = array<i32>} : memref<40x288xf32, #tpu.memory_space<vmem>>, vector<4x288xf32>,
    %c0_4 = arith.constant 0 : index
    %c0_5 = arith.constant 0 : index
    %c1 = arith.constant 1 : index
    %3 = vector.load %arg2[%c0_4, %c0_5, %c1] : memref<1x4x342xf32, #tpu.memory_space<vmem>>, vector<1x4x288xf32>
    %4 = vector.shape_cast %3 : vector<1x4x288xf32> to vector<4x288xf32>
    %c4 = arith.constant 4 : index
    %c0_6 = arith.constant 0 : index
    %5 = vector.load %arg4[%c4, %c0_6] : memref<40x288xf32, #tpu.memory_space<vmem>>, vector<4x288xf32>
    tpu.vector_store %arg4[%c4, %c0_6], %4 {strides = array<i32>} : memref<40x288xf32, #tpu.memory_space<vmem>>, vector<4x288xf32>,
    %c0_7 = arith.constant 0 : index
    %c0_8 = arith.constant 0 : index
    %c2 = arith.constant 2 : index
    %6 = vector.load %arg2[%c0_7, %c0_8, %c2] : memref<1x4x342xf32, #tpu.memory_space<vmem>>, vector<1x4x288xf32>
    %7 = vector.shape_cast %6 : vector<1x4x288xf32> to vector<4x288xf32>
    %c8 = arith.constant 8 : index
    %c0_9 = arith.constant 0 : index
    %8 = vector.load %arg4[%c8, %c0_9] : memref<40x288xf32, #tpu.memory_space<vmem>>, vector<4x288xf32>
    tpu.vector_store %arg4[%c8, %c0_9], %7 {strides = array<i32>} : memref<40x288xf32, #tpu.memory_space<vmem>>, vector<4x288xf32>,
    %c0_10 = arith.constant 0 : index
    %c0_11 = arith.constant 0 : index
    %c18 = arith.constant 18 : index
    %9 = vector.load %arg2[%c0_10, %c0_11, %c18] : memref<1x4x342xf32, #tpu.memory_space<vmem>>, vector<1x4x288xf32>
    %10 = vector.shape_cast %9 : vector<1x4x288xf32> to vector<4x288xf32>
    %c12 = arith.constant 12 : index
    %c0_12 = arith.constant 0 : index
    %11 = vector.load %arg4[%c12, %c0_12] : memref<40x288xf32, #tpu.memory_space<vmem>>, vector<4x288xf32>
    tpu.vector_store %arg4[%c12, %c0_12], %10 {strides = array<i32>} : memref<40x288xf32, #tpu.memory_space<vmem>>, vector<4x288xf32>,
    %c0_13 = arith.constant 0 : index
    %c0_14 = arith.constant 0 : index
    %c19 = arith.constant 19 : index
    %12 = vector.load %arg2[%c0_13, %c0_14, %c19] : memref<1x4x342xf32, #tpu.memory_space<vmem>>, vector<1x4x288xf32>
    %13 = vector.shape_cast %12 : vector<1x4x288xf32> to vector<4x288xf32>
    %c16 = arith.constant 16 : index
    %c0_15 = arith.constant 0 : index
    %14 = vector.load %arg4[%c16, %c0_15] : memref<40x288xf32, #tpu.memory_space<vmem>>, vector<4x288xf32>
    tpu.vector_store %arg4[%c16, %c0_15], %13 {strides = array<i32>} : memref<40x288xf32, #tpu.memory_space<vmem>>, vector<4x288xf32>,
    %c0_16 = arith.constant 0 : index
    %c0_17 = arith.constant 0 : index
    %c20 = arith.constant 20 : index
    %15 = vector.load %arg2[%c0_16, %c0_17, %c20] : memref<1x4x342xf32, #tpu.memory_space<vmem>>, vector<1x4x288xf32>
    %16 = vector.shape_cast %15 : vector<1x4x288xf32> to vector<4x288xf32>
    %c20_18 = arith.constant 20 : index
    %c0_19 = arith.constant 0 : index
    %17 = vector.load %arg4[%c20_18, %c0_19] : memref<40x288xf32, #tpu.memory_space<vmem>>, vector<4x288xf32>
    tpu.vector_store %arg4[%c20_18, %c0_19], %16 {strides = array<i32>} : memref<40x288xf32, #tpu.memory_space<vmem>>, vector<4x288xf32>,
    %c0_20 = arith.constant 0 : index
    %c0_21 = arith.constant 0 : index
    %c36 = arith.constant 36 : index
    %18 = vector.load %arg2[%c0_20, %c0_21, %c36] : memref<1x4x342xf32, #tpu.memory_space<vmem>>, vector<1x4x288xf32>
    %19 = vector.shape_cast %18 : vector<1x4x288xf32> to vector<4x288xf32>
    %c24 = arith.constant 24 : index
    %c0_22 = arith.constant 0 : index
    %20 = vector.load %arg4[%c24, %c0_22] : memref<40x288xf32, #tpu.memory_space<vmem>>, vector<4x288xf32>
    tpu.vector_store %arg4[%c24, %c0_22], %19 {strides = array<i32>} : memref<40x288xf32, #tpu.memory_space<vmem>>, vector<4x288xf32>,
    %c0_23 = arith.constant 0 : index
    %c0_24 = arith.constant 0 : index
    %c37 = arith.constant 37 : index
    %21 = vector.load %arg2[%c0_23, %c0_24, %c37] : memref<1x4x342xf32, #tpu.memory_space<vmem>>, vector<1x4x288xf32>
    %22 = vector.shape_cast %21 : vector<1x4x288xf32> to vector<4x288xf32>
    %c28 = arith.constant 28 : index
    %c0_25 = arith.constant 0 : index
    %23 = vector.load %arg4[%c28, %c0_25] : memref<40x288xf32, #tpu.memory_space<vmem>>, vector<4x288xf32>
    tpu.vector_store %arg4[%c28, %c0_25], %22 {strides = array<i32>} : memref<40x288xf32, #tpu.memory_space<vmem>>, vector<4x288xf32>,
    %c0_26 = arith.constant 0 : index
    %c0_27 = arith.constant 0 : index
    %c38 = arith.constant 38 : index
    %24 = vector.load %arg2[%c0_26, %c0_27, %c38] : memref<1x4x342xf32, #tpu.memory_space<vmem>>, vector<1x4x288xf32>
    %25 = vector.shape_cast %24 : vector<1x4x288xf32> to vector<4x288xf32>
    %c32 = arith.constant 32 : index
    %c0_28 = arith.constant 0 : index
    %26 = vector.load %arg4[%c32, %c0_28] : memref<40x288xf32, #tpu.memory_space<vmem>>, vector<4x288xf32>
    tpu.vector_store %arg4[%c32, %c0_28], %25 {strides = array<i32>} : memref<40x288xf32, #tpu.memory_space<vmem>>, vector<4x288xf32>,
    %cst = arith.constant 1.000000e+00 : f32
    %27 = vector.broadcast %cst : f32 to vector<1x288xf32>
    %c36_29 = arith.constant 36 : index
    %c0_30 = arith.constant 0 : index
    %28 = vector.load %arg4[%c36_29, %c0_30] : memref<40x288xf32, #tpu.memory_space<vmem>>, vector<1x288xf32>
    tpu.vector_store %arg4[%c36_29, %c0_30], %27 {strides = array<i32>} : memref<40x288xf32, #tpu.memory_space<vmem>>, vector<1x288xf32>,
    %cst_31 = arith.constant 0.000000e+00 : f32
    %29 = vector.broadcast %cst_31 : f32 to vector<3x288xf32>
    %c37_32 = arith.constant 37 : index
    %c0_33 = arith.constant 0 : index
    %30 = vector.load %arg4[%c37_32, %c0_33] : memref<40x288xf32, #tpu.memory_space<vmem>>, vector<3x288xf32>
    tpu.vector_store %arg4[%c37_32, %c0_33], %29 {strides = array<i32>} : memref<40x288xf32, #tpu.memory_space<vmem>>, vector<3x288xf32>,
    %c0_34 = arith.constant 0 : index
    %c0_35 = arith.constant 0 : index
    %31 = vector.load %arg1[%c0_34, %c0_35] : memref<32x40xf32, #tpu.memory_space<vmem>>, vector<32x40xf32>
    %c0_36 = arith.constant 0 : index
    %c0_37 = arith.constant 0 : index
    %32 = vector.load %arg4[%c0_36, %c0_37] : memref<40x288xf32, #tpu.memory_space<vmem>>, vector<40x288xf32>
    %cst_38 = arith.constant dense<0.000000e+00> : vector<32x288xf32>
    %33 = tpu.matmul %31, %32, %cst_38 {dimension_numbers = #tpu.dot_dimension_numbers<[1], [0], [0], [1], [0, 0, 1, 1], [], []>} : vector<32x40xf32>, vector<40x288xf32>, vector<32x288xf32> -> vector<32x288xf32>
    %cst_39 = arith.constant 0.000000e+00 : f32
    %34 = vector.broadcast %cst_39 : f32 to vector<32x288xf32>
    %35 = arith.maximumf %33, %34 : vector<32x288xf32>
    %36 = arith.truncf %35 : vector<32x288xf32> to vector<32x288xbf16>
    %c0_40 = arith.constant 0 : index
    %c0_41 = arith.constant 0 : index
    %c0_42 = arith.constant 0 : index
    %37 = vector.load %arg3[%c0_40, %c0_41, %c0_42] : memref<1x32x288xbf16, #tpu.memory_space<vmem>>, vector<1x32x288xbf16>
    %38 = vector.shape_cast %37 : vector<1x32x288xbf16> to vector<32x288xbf16>
    %39 = vector.shape_cast %36 : vector<32x288xbf16> to vector<1x32x288xbf16>
    tpu.vector_store %arg3[%c0_40, %c0_41, %c0_42], %39 {strides = array<i32>} : memref<1x32x288xbf16, #tpu.memory_space<vmem>>, vector<1x32x288xbf16>,
    return
  }
  func.func @transform_0(%arg0: i32) -> (i32, i32) {
    %c0_i32 = arith.constant 0 : i32
    %c0_i32_0 = arith.constant 0 : i32
    %c0_i32_1 = arith.constant 0 : i32
    return %c0_i32, %c0_i32_0 : i32, i32
  }
  func.func @transform_1(%arg0: i32) -> (i32, i32, i32) {
    %c0_i32 = arith.constant 0 : i32
    %c0_i32_0 = arith.constant 0 : i32
    %c0_i32_1 = arith.constant 0 : i32
    return %arg0, %c0_i32, %c0_i32_0 : i32, i32, i32
  }
  func.func @transform_2(%arg0: i32) -> (i32, i32, i32) {
    %c0_i32 = arith.constant 0 : i32
    %c0_i32_0 = arith.constant 0 : i32
    %c0_i32_1 = arith.constant 0 : i32
    return %arg0, %c0_i32, %c0_i32_0 : i32, i32, i32
  }
}

</mosaic_0001>

<bundles_post_ra>
// kernel: unet_up_pallas.1
= control target key start
LH: loop header
LB: loop body
LE: loop exit
PB: predicated region body
PF: predicated region fallthrough
CT: control target
= control target key end

     0   :  { %s663_s9 = smov 0   ;;  %s786_s0 = inlined_call_operand.vmem [shape: f32[32,40], index: 0, kind: input, shape index: {}]   ;;  %s787_s1 = inlined_call_operand.vmem [shape: f32[2,4,342], index: 1, kind: input, shape index: {}]   ;;  %s788_s2 = inlined_call_operand.vmem [shape: bf16[2,32,288], index: 2, kind: output, shape index: {}]  }
   0x1 LB: > { %s579_s10 = sadd.s32 4294967295, %s636_s9   ;;  %p583_p0 = scmp.ge.s32.totalorder %s636_s9, 1  ;;  %s636_s9 = sphi %s663_s9, %s12_s9  }
   0x2   : > { %p112_p1 = scmp.lt.s32.totalorder %s636_s9, 3 }
   0x4   : > { %p113_p2 = pnand %p583_p0, %p112_p1 }
   0x5   : > { %p134_p3 = scmp.lt.s32.totalorder (!%p113_p2), %s579_s10, 1  ;;  %s638_s15 = smov (!%p113_p2), 127  }
   0x6   : > { %116 = sbr.rel (%p113_p2) target bundleno = 393 (0x189), region = 28  ;;  %s639_s16 = smov (!%p113_p2), 126  }
   0x7   : > { %s640_s17 = smov (!%p113_p2), 110   ;;  %s641_s18 = smov (!%p113_p2), 109  }
   0x8   : > { %s642_s19 = smov (!%p113_p2), 108   ;;  %s643_s20 = smov (!%p113_p2), 92  }
   0x9   : > { %s644_s21 = smov (!%p113_p2), 91   ;;  %s645_s22 = smov (!%p113_p2), 90  }
   0xb   : > { %s790_s10 = smov (!%p134_p3, %s579_s10), 1  ;;  %vm159_vm0 = vcmask 257024   ;;  %vm186_vm1 = vcmask 261124   ;;  %vm281_vm2 = vcmask 883712   ;;  %vm255_vm3 = vcmask 891904  }
   0xc   : > { %s610_s11 = smul.u32 12, %s790_s10  ;;  %v366_v49 = vlaneseq  ;;  %vm375_vm5 = vcmask 261125   ;;  %v646_v50 = vmov 1.0   ;;  %v647_v51 = vmov 0.0  }
   0xd   : > { %376 = vst.msk [vmem:[#allocation2 + $0x70] sm:$0xe0] %vm375_vm5, %v647_v51  ;;  %vm306_vm6 = vcmask 752640   ;;  %vm178_vm7 = vcmask 1039360   ;;  %vm332_vm8 = vcmask 744448   ;;  %vm357_vm9 = vcmask 736256  }
   0xe   : > { %s677_s14 = scalar_lea.vmem %s787_s1, %s610_s11  ;;  %vm368_vm4 = vcmp.lt.s32.totalorder %v366_v49, 288  ;;  %373 = vst [vmem:[#allocation2 + $0x60] sm:$0xe0] %v647_v51  ;;  %vm204_vm10 = vcmask 1031168   ;;  %vm230_vm11 = vcmask 900096   ;;  %vm396_vm12 = vcmask 326656  }
   0xf   : > { %v145_v0 = vld [vmem:[%s677_s14 + $0x8] sm:$0xf]  ;;  %v681_v1 = vld [vmem:[%s677_s14] sm:$0xff]  ;;  %371 = vst.msk [vmem:[#allocation2 + $0x64] ss:$8 sm:$0x7] %vm368_vm4, %v646_v50 }
  0x10   : > { %150 = vst [vmem:[#allocation1 + $0x10] ss:$2 sm:$0xff] %v145_v0  ;;  %v162_v2 = vld [vmem:[%s677_s14 + $0x8] sm:$0xf]  ;;  %s611_s3 = smul.u32 48, %s790_s10 }
  0x11   : > { %148 = vst [vmem:[#allocation1] ss:$2 sm:$0xff] %v681_v1  ;;  %v189_v6 = vld [vmem:[%s677_s14 + $0x8] sm:$0xf] }
  0x12   : > { %v214_v10 = vld [vmem:[%s677_s14 + $0x8] sm:$0xf]  ;;  %374 = vst [vmem:[#allocation2 + $0x68] sm:$0xe0] %v647_v51  ;;  %s769_s6 = scalar_lea.vmem %s788_s2, %s611_s3 }
  0x13   : > { %v240_v14 = vld [vmem:[%s677_s14 + $0x8] sm:$0xf] }
  0x14   : > { %v265_v18 = vld [vmem:[%s677_s14 + $0x8] sm:$0xf] }
  0x15   : > { %v291_v22 = vld [vmem:[%s677_s14 + $0x8] sm:$0xf] }
  0x16   : > { %v316_v26 = vld [vmem:[%s677_s14 + $0x8] sm:$0xf] }
  0x17   : > { %v685_v3 = vld.sshfl [vmem:[#allocation1 + $0x10] sm:$0xff pattern:$0x75316420]  ;;  %v342_v30 = vld [vmem:[%s677_s14 + $0x8] sm:$0xf] }
  0x18   : > { %168 = vst [vmem:[#allocation1 + $0x11] ss:$2 sm:$0xff] %v162_v2  ;;  %v151_v4 = vld.sshfl [vmem:[#allocation1] sm:$0xff pattern:$0x75316420] }
  0x19   : > { %v152_v5 = vld.sshfl [vmem:[#allocation1 + $0x8] sm:$0xff pattern:$0x75316420]  ;;  %157 = vst [vmem:[#allocation2] sm:$0xf] %v151_v4 }
  0x1a   : > { %166 = vst [vmem:[#allocation1 + $0x1] ss:$2 sm:$0xff] %v681_v1 }
  0x1b   : > { %158 = vst [vmem:[#allocation2 + $0x8] sm:$0xf] %v152_v5 }
  0x1c   : > { %160 = vst.msk [vmem:[#allocation2 + $0x10] sm:$0xf] %vm159_vm0, %v685_v3 }
  0x1f   : > { %v171_v7 = vld.sshfl [vmem:[#allocation1 + $0x10] sm:$0xff pattern:$0x75316420] }
  0x20   : > { %176 = vrot.lane.b32.xlu0 %v171_v7, %s638_s15  ;;  %194 = vst [vmem:[#allocation1 + $0x10] ss:$2 sm:$0xff] %v189_v6 }
  0x21   : > { %v690_v8 = vld.sshfl [vmem:[#allocation1] sm:$0xff pattern:$0x75316420]  ;;  %v692_v9 = vld.sshfl [vmem:[#allocation1 + $0x8] sm:$0xff pattern:$0x75316420] }
  0x22   : > { %192 = vst [vmem:[#allocation1] ss:$2 sm:$0xff] %v681_v1 }
  0x27   : > { %v197_v11 = vld.sshfl [vmem:[#allocation1 + $0x10] sm:$0xff pattern:$0x75316420] }
  0x28   : > { %202 = vrot.lane.b32.xlu2 %v197_v11, %s639_s16  ;;  %220 = vst [vmem:[#allocation1 + $0x11] ss:$2 sm:$0xff] %v214_v10 }
  0x29   : > { %v195_v12 = vld.sshfl [vmem:[#allocation1] sm:$0xff pattern:$0x75316420]  ;;  %v196_v13 = vld.sshfl [vmem:[#allocation1 + $0x8] sm:$0xff pattern:$0x75316420] }
  0x2a   : > { %218 = vst [vmem:[#allocation1 + $0x1] ss:$2 sm:$0xff] %v681_v1 }
  0x2f   : > { %v223_v15 = vld.sshfl [vmem:[#allocation1 + $0x10] sm:$0xff pattern:$0x75316420] }
  0x30   : > { %228 = vrot.lane.b32.xlu0 %v223_v15, %s640_s17  ;;  %245 = vst [vmem:[#allocation1 + $0x10] ss:$2 sm:$0xff] %v240_v14 }
  0x31   : > { %v221_v16 = vld.sshfl [vmem:[#allocation1] sm:$0xff pattern:$0x75316420]  ;;  %v222_v17 = vld.sshfl [vmem:[#allocation1 + $0x8] sm:$0xff pattern:$0x75316420] }
  0x32   : > { %243 = vst [vmem:[#allocation1] ss:$2 sm:$0xff] %v681_v1 }
  0x37   : > { %v248_v19 = vld.sshfl [vmem:[#allocation1 + $0x10] sm:$0xff pattern:$0x75316420] }
  0x38   : > { %253 = vrot.lane.b32.xlu1 %v248_v19, %s641_s18  ;;  %271 = vst [vmem:[#allocation1 + $0x11] ss:$2 sm:$0xff] %v265_v18 }
  0x39   : > { %v247_v20 = vld.sshfl [vmem:[#allocation1 + $0x8] sm:$0xff pattern:$0x75316420]  ;;  %v246_v21 = vld.sshfl [vmem:[#allocation1] sm:$0xff pattern:$0x75316420] }
  0x3a   : > { %251 = vrot.lane.b32.xlu0 %v247_v20, %s641_s18  ;;  %249 = vrot.lane.b32.xlu2 %v246_v21, %s641_s18  ;;  %269 = vst [vmem:[#allocation1 + $0x1] ss:$2 sm:$0xff] %v681_v1  ;;  %v377_v21 = vld [vmem:[%s786_s0] sm:$0xff] }
  0x3f   : > { %v274_v23 = vld.sshfl [vmem:[#allocation1 + $0x10] sm:$0xff pattern:$0x75316420] }
  0x40   : > { %296 = vst [vmem:[#allocation1 + $0x10] ss:$2 sm:$0xff] %v291_v22 }
  0x41   : > { %v272_v24 = vld.sshfl [vmem:[#allocation1] sm:$0xff pattern:$0x75316420]  ;;  %v273_v25 = vld.sshfl [vmem:[#allocation1 + $0x8] sm:$0xff pattern:$0x75316420] }
  0x42   : > { %279 = vrot.lane.b32.xlu2 %v274_v23, %s642_s19  ;;  %275 = vrot.lane.b32.xlu1 %v272_v24, %s642_s19  ;;  %294 = vst [vmem:[#allocation1] ss:$2 sm:$0xff] %v681_v1 }
  0x47   : > { %v299_v27 = vld.sshfl [vmem:[#allocation1 + $0x10] sm:$0xff pattern:$0x75316420] }
  0x48   : > { %322 = vst [vmem:[#allocation1 + $0x11] ss:$2 sm:$0xff] %v316_v26  ;;  %304 = vrot.lane.b32.xlu0 %v299_v27, %s643_s20 }
  0x49   : > { %v297_v28 = vld.sshfl [vmem:[#allocation1] sm:$0xff pattern:$0x75316420]  ;;  %v298_v29 = vld.sshfl [vmem:[#allocation1 + $0x8] sm:$0xff pattern:$0x75316420] }
  0x4a   : > { %277 = vrot.lane.b32.xlu2 %v273_v25, %s642_s19  ;;  %300 = vrot.lane.b32.xlu1 %v297_v28, %s643_s20  ;;  %320 = vst [vmem:[#allocation1 + $0x1] ss:$2 sm:$0xff] %v681_v1  ;;  %v378_v28 = vld [vmem:[%s786_s0 + $0x8] sm:$0xff] }
  0x4f   : > { %v325_v31 = vld.sshfl [vmem:[#allocation1 + $0x10] sm:$0xff pattern:$0x75316420] }
  0x50   : > { %347 = vst [vmem:[#allocation1 + $0x10] ss:$2 sm:$0xff] %v342_v30 }
  0x51   : > { %v323_v32 = vld.sshfl [vmem:[#allocation1] sm:$0xff pattern:$0x75316420]  ;;  %v324_v33 = vld.sshfl [vmem:[#allocation1 + $0x8] sm:$0xff pattern:$0x75316420] }
  0x52   : > { %302 = vrot.lane.b32.xlu2 %v298_v29, %s643_s20  ;;  %330 = vrot.lane.b32.xlu1 %v325_v31, %s644_s21  ;;  %345 = vst [vmem:[#allocation1] ss:$2 sm:$0xff] %v681_v1 }
  0x53   : > { %326 = vrot.lane.b32.xlu0 %v323_v32, %s644_s21 }
  0x57   : > { %v350_v34 = vld.sshfl [vmem:[#allocation1 + $0x10] sm:$0xff pattern:$0x75316420] }
  0x59   : > { %v349_v35 = vld.sshfl [vmem:[#allocation1 + $0x8] sm:$0xff pattern:$0x75316420]  ;;  %v348_v36 = vld.sshfl [vmem:[#allocation1] sm:$0xff pattern:$0x75316420] }
  0x5a   : > { %224 = vrot.lane.b32.xlu2 %v221_v16, %s640_s17  ;;  %328 = vrot.lane.b32.xlu1 %v324_v33, %s644_s21  ;;  %v379_v33 = vld [vmem:[%s786_s0 + $0x10] sm:$0xff] }
  0x5b   : > { %355 = vrot.lane.b32.xlu0 %v350_v34, %s645_s22  ;;  %v380_v34 = vld [vmem:[%s786_s0 + $0x18] sm:$0xff] }
  0x62   : > { %200 = vrot.lane.b32.xlu1 %v196_v13, %s639_s16  ;;  %353 = vrot.lane.b32.xlu2 %v349_v35, %s645_s22 }
  0x63   : > { %198 = vrot.lane.b32.xlu0 %v195_v12, %s639_s16 }
  0x6a   : > { %174 = vrot.lane.b32.xlu2 %v692_v9, %s638_s15  ;;  %351 = vrot.lane.b32.xlu1 %v348_v36, %s645_s22 }
  0x6b   : > { %226 = vrot.lane.b32.xlu0 %v222_v17, %s640_s17 }
  0x72   : > { %172 = vrot.lane.b32.xlu1 %v690_v8, %s638_s15 }
  0x82   : > { %v719_v37 = vpop.permute.xlu2 %202 }
  0x83   : > { %212 = vst.msk [vmem:[#allocation2 + $0x28] sm:$0xf] %vm159_vm0, %v719_v37 }
  0x92   : > { %v177_v38 = vpop.permute.xlu0 %176 }
  0x93   : > { %187 = vst.msk [vmem:[#allocation2 + $0x10] sm:$0xf0] %vm186_vm1, %v177_v38 }
  0x94   : > { %v250_v39 = vpop.permute.xlu2 %249 }
  0x9a   : > { %v383_v22 = vld [vmem:[#allocation2 + $0x10] sm:$0xff] }
  0x9c   : > { %v280_v40 = vpop.permute.xlu2 %279 }
  0x9d   : > { %289 = vst.msk [vmem:[#allocation2 + $0x40] sm:$0xf0] %vm186_vm1, %v280_v40 }
  0xa2   : > { %v725_v41 = vpop.permute.xlu0 %228 }
  0xa3   : > { %238 = vst.msk [vmem:[#allocation2 + $0x28] sm:$0xf0] %vm186_vm1, %v725_v41 }
  0xa4   : > { %v278_v42 = vpop.permute.xlu2 %277 }
  0xa5   : > { %v283_v43 = vsel %vm281_vm2, %v278_v42, %v280_v40 }
  0xa6   : > { %288 = vst [vmem:[#allocation2 + $0x38] sm:$0xf0] %v283_v43 }
  0xaa   : > { %v254_v44 = vpop.permute.xlu1 %253  ;;  %v386_v18 = vld [vmem:[#allocation2 + $0x28] sm:$0xff] }
  0xab   : > { %263 = vst.msk [vmem:[#allocation2 + $0x40] sm:$0xf] %vm159_vm0, %v254_v44 }
  0xac   : > { %v252_v45 = vpop.permute.xlu0 %251  ;;  %v303_v46 = vpop.permute.xlu2 %302 }
  0xad   : > { %v256_v47 = vsel %vm255_vm3, %v250_v39, %v252_v45  ;;  %v257_v48 = vsel %vm255_vm3, %v252_v45, %v254_v44 }
  0xae   : > { %261 = vst [vmem:[#allocation2 + $0x30] sm:$0xf] %v256_v47 }
  0xaf   : > { %262 = vst [vmem:[#allocation2 + $0x38] sm:$0xf] %v257_v48 }
  0xb2   : > { %v389_v14 = vld [vmem:[#allocation2 + $0x40] sm:$0xff] }
  0xb4   : > { %v276_v52 = vpop.permute.xlu1 %275  ;;  %v225_v53 = vpop.permute.xlu2 %224 }
  0xb5   : > { %v282_v54 = vsel %vm281_vm2, %v276_v52, %v278_v42 }
  0xb6   : > { %287 = vst [vmem:[#allocation2 + $0x30] sm:$0xf0] %v282_v54  ;;  %v388_v13 = vld [vmem:[#allocation2 + $0x38] sm:$0xff] }
  0xba   : > { %v305_v55 = vpop.permute.xlu0 %304 }
  0xbb   : > { %v308_v56 = vsel %vm306_vm6, %v303_v46, %v305_v55  ;;  %314 = vst.msk [vmem:[#allocation2 + $0x58] sm:$0xf] %vm159_vm0, %v305_v55 }
  0xbc   : > { %313 = vst [vmem:[#allocation2 + $0x50] sm:$0xf] %v308_v56  ;;  %v301_v57 = vpop.permute.xlu1 %300  ;;  %v354_v58 = vpop.permute.xlu2 %353 }
  0xbd   : > { %v307_v59 = vsel %vm306_vm6, %v301_v57, %v303_v46  ;;  %v387_v30 = vld [vmem:[#allocation2 + $0x30] sm:$0xff] }
  0xbe   : > { %312 = vst [vmem:[#allocation2 + $0x48] sm:$0xf] %v307_v59 }
  0xc4   : > { %v331_v60 = vpop.permute.xlu1 %330  ;;  %v175_v61 = vpop.permute.xlu2 %174 }
  0xc5   : > { %340 = vst.msk [vmem:[#allocation2 + $0x58] sm:$0xf0] %vm186_vm1, %v331_v60  ;;  %v327_v62 = vpop.permute.xlu0 %326  ;;  %v180_v63 = vsel %vm178_vm7, %v175_v61, %v177_v38 }
  0xc6   : > { %185 = vst [vmem:[#allocation2 + $0x8] sm:$0xf0] %v180_v63 }
  0xcc   : > { %v329_v0 = vpop.permute.xlu1 %328  ;;  %v392_v12 = vld [vmem:[#allocation2 + $0x58] sm:$0xff] }
  0xcd   : > { %v333_v1 = vsel %vm332_vm8, %v327_v62, %v329_v0  ;;  %v334_v2 = vsel %vm332_vm8, %v329_v0, %v331_v60  ;;  %v356_v3 = vpop.permute.xlu0 %355  ;;  %v382_v29 = vld [vmem:[#allocation2 + $0x8] sm:$0xff] }
  0xce   : > { %338 = vst [vmem:[#allocation2 + $0x48] sm:$0xf0] %v333_v1  ;;  %v359_v4 = vsel %vm357_vm9, %v354_v58, %v356_v3 }
  0xcf   : > { %339 = vst [vmem:[#allocation2 + $0x50] sm:$0xf0] %v334_v2 }
  0xd0   : > { %364 = vst [vmem:[#allocation2 + $0x68] sm:$0xf] %v359_v4 }
  0xd1   : > { %365 = vst.msk [vmem:[#allocation2 + $0x70] sm:$0xf] %vm159_vm0, %v356_v3 }
  0xd4   : > { %v201_v5 = vpop.permute.xlu1 %200 }
  0xd5   : > { %v206_v6 = vsel %vm204_vm10, %v201_v5, %v719_v37  ;;  %v199_v7 = vpop.permute.xlu0 %198  ;;  %v390_v27 = vld [vmem:[#allocation2 + $0x48] sm:$0xff] }
  0xd6   : > { %211 = vst [vmem:[#allocation2 + $0x20] sm:$0xf] %v206_v6  ;;  %v205_v8 = vsel %vm204_vm10, %v199_v7, %v201_v5  ;;  %v391_v11 = vld [vmem:[#allocation2 + $0x50] sm:$0xff] }
  0xd7   : > { %210 = vst [vmem:[#allocation2 + $0x18] sm:$0xf] %v205_v8  ;;  %v394_v9 = vld [vmem:[#allocation2 + $0x68] sm:$0xff] }
  0xd8   : > { %v395_v10 = vld [vmem:[#allocation2 + $0x70] sm:$0xff]  ;;  %605 = vmatpush.msra.mxu1 %v394_v9 }
  0xd9   : > { %478 = vmatpush.msra.mxu2 %v395_v10 }
  0xda   : > { %606 = vmatpush.msra.mxu1 %v391_v11 }
  0xdb   : > { %479 = vmatpush.msra.mxu2 %v392_v12 }
  0xdc   : > { %607 = vmatpush.msra.mxu1 %v388_v13  ;;  %v352_v15 = vpop.permute.xlu1 %351 }
  0xdd   : > { %480 = vmatpush.msra.mxu2 %v389_v14  ;;  %v227_v16 = vpop.permute.xlu0 %226  ;;  %v358_v17 = vsel %vm357_vm9, %v352_v15, %v354_v58 }
  0xde   : > { %v231_v19 = vsel %vm230_vm11, %v225_v53, %v227_v16  ;;  %v232_v20 = vsel %vm230_vm11, %v227_v16, %v725_v41  ;;  %363 = vst [vmem:[#allocation2 + $0x60] sm:$0xf] %v358_v17 }
  0xdf   : > { %481 = vmatpush.msra.mxu2 %v386_v18  ;;  %236 = vst [vmem:[#allocation2 + $0x18] sm:$0xf0] %v231_v19 }
  0xe0   : > { %237 = vst [vmem:[#allocation2 + $0x20] sm:$0xf0] %v232_v20 }
  0xe1   : > { %482 = vmatpush.msra.mxu2 %v383_v22 }
  0xe2   : > { %594 = vmatmul.msk.f32.vlgmr.msra.gmra.mxu2 %vm396_vm12, %v377_v21 }
  0xe4   : > { %v173_v23 = vpop.permute.xlu1 %172 }
  0xe5   : > { %v179_v24 = vsel %vm178_vm7, %v173_v23, %v175_v61  ;;  %v393_v25 = vld [vmem:[#allocation2 + $0x60] sm:$0xff] }
  0xe6   : > { %184 = vst [vmem:[#allocation2] sm:$0xf0] %v179_v24  ;;  %420 = vmatpush.msra.mxu0 %v393_v25  ;;  %600 = vmatpush.msra.mxu3 %v393_v25  ;;  %v384_v31 = vld [vmem:[#allocation2 + $0x18] sm:$0xff] }
  0xe7   : > { %v385_v26 = vld [vmem:[#allocation2 + $0x20] sm:$0xff] }
  0xe8   : > { %608 = vmatpush.msra.mxu1 %v385_v26  ;;  %421 = vmatpush.msra.mxu0 %v390_v27 }
  0xe9   : > { %601 = vmatpush.msra.mxu3 %v390_v27 }
  0xea   : > { %609 = vmatpush.msra.mxu1 %v382_v29  ;;  %422 = vmatpush.msra.mxu0 %v387_v30 }
  0xeb   : > { %602 = vmatpush.msra.mxu3 %v387_v30  ;;  %595 = vmatmul.msk.f32.gmra.mxu2 %vm396_vm12, %v378_v28 }
  0xec   : > { %423 = vmatpush.msra.mxu0 %v384_v31  ;;  %591 = vmatmul.msk.f32.vlgmr.msra.gmra.mxu1 %vm396_vm12, %v378_v28 }
  0xed   : > { %603 = vmatpush.msra.mxu3 %v384_v31  ;;  %v381_v32 = vld [vmem:[#allocation2] sm:$0xff] }
  0xee   : > { %424 = vmatpush.msra.mxu0 %v381_v32 }
  0xef   : > { %604 = vmatpush.msra.mxu3 %v381_v32  ;;  %586 = vmatmul.msk.f32.vlgmr.msra.gmra.mxu0 %vm396_vm12, %v377_v21 }
  0xf0   : > { %449 = vmatpush.msrb.mxu0 %v394_v9  ;;  %587 = vmatmul.msk.f32.vlgmr.msra.gmra.mxu3 %vm396_vm12, %v378_v28 }
  0xf2   : > { %450 = vmatpush.msrb.mxu0 %v391_v11 }
  0xf3   : > { %596 = vmatmul.msk.f32.gmra.mxu2 %vm396_vm12, %v379_v33 }
  0xf4   : > { %451 = vmatpush.msrb.mxu0 %v388_v13  ;;  %592 = vmatmul.msk.f32.gmra.mxu1 %vm396_vm12, %v379_v33 }
  0xf6   : > { %452 = vmatpush.msrb.mxu0 %v385_v26 }
  0xf8   : > { %453 = vmatpush.msrb.mxu0 %v382_v29  ;;  %588 = vmatmul.msk.f32.gmra.mxu3 %vm396_vm12, %v379_v33 }
  0xf9   : > { %590 = vmatmul.msk.f32.vlgmr.msrb.gmra.mxu0 %vm396_vm12, %v377_v21 }
  0xfb   : > { %597 = vmatmul.msk.f32.gmra.mxu2 %vm396_vm12, %v380_v34 }
  0xfc   : > { %593 = vmatmul.msk.f32.gmra.mxu1 %vm396_vm12, %v380_v34 }
 0x100   : > { %589 = vmatmul.msk.f32.gmra.mxu3 %vm396_vm12, %v380_v34 }
 0x165   : > { %v484_v35 = vpop.f32.mrf.mxu2 }
 0x166   : > { %v498_v36 = vmax.f32 %v484_v35, 0.0 }
 0x168   : > { %v509_v37 = vpack.c.bf16 %v498_v36, %v498_v36 }
 0x169   : > { %v458_v38 = vpop.f32.mrf.mxu1 }
 0x16a   : > { %517 = vst.msk [vmem:[%s769_s6 + $0x8] sm:$0xf] %vm159_vm0, %v509_v37  ;;  %v500_v43 = vmax.f32 %v458_v38, 0.0 }
 0x16c   : > { %v426_v39 = vpop.f32.mrf.mxu0 }
 0x16d   : > { %v496_v45 = vmax.f32 %v426_v39, 0.0 }
 0x16e   : > { %v487_v40 = vpop.f32.mrf.mxu2 }
 0x16f   : > { %v501_v41 = vmax.f32 %v487_v40, 0.0 }
 0x171   : > { %v511_v42 = vpack.c.bf16 %v501_v41, %v501_v41  ;;  %v461_v48 = vpop.f32.mrf.mxu1 }
 0x172   : > { %v503_v55 = vmax.f32 %v461_v48, 0.0 }
 0x173   : > { %v429_v44 = vpop.f32.mrf.mxu3  ;;  %519 = vst.msk [vmem:[%s769_s6 + $0x14] sm:$0xf] %vm159_vm0, %v511_v42 }
 0x174   : > { %v499_v46 = vmax.f32 %v429_v44, 0.0 }
 0x176   : > { %v455_v47 = vpop.f32.mrf.mxu0  ;;  %v510_v49 = vpack.c.bf16 %v500_v43, %v499_v46  ;;  %v490_v51 = vpop.f32.mrf.mxu2 }
 0x177   : > { %v497_v50 = vmax.f32 %v455_v47, 0.0  ;;  %v504_v52 = vmax.f32 %v490_v51, 0.0 }
 0x178   : > { %518 = vst [vmem:[%s769_s6 + $0xc] sm:$0xff] %v510_v49 }
 0x179   : > { %v508_v53 = vpack.c.bf16 %v497_v50, %v496_v45  ;;  %v513_v54 = vpack.c.bf16 %v504_v52, %v504_v52  ;;  %v464_v60 = vpop.f32.mrf.mxu1 }
 0x17a   : > { %v506_v63 = vmax.f32 %v464_v60, 0.0 }
 0x17b   : > { %516 = vst [vmem:[%s769_s6] sm:$0xff] %v508_v53  ;;  %v432_v56 = vpop.f32.mrf.mxu3 }
 0x17c   : > { %521 = vst.msk [vmem:[%s769_s6 + $0x20] sm:$0xf] %vm159_vm0, %v513_v54  ;;  %v502_v57 = vmax.f32 %v432_v56, 0.0 }
 0x17e   : > { %v512_v58 = vpack.c.bf16 %v503_v55, %v502_v57  ;;  %v493_v59 = vpop.f32.mrf.mxu2 }
 0x17f   : > { %v507_v61 = vmax.f32 %v493_v59, 0.0 }
 0x180   : > { %520 = vst [vmem:[%s769_s6 + $0x18] sm:$0xff] %v512_v58 }
 0x181   : > { %v515_v62 = vpack.c.bf16 %v507_v61, %v507_v61 }
 0x183   : > { %v435_v0 = vpop.f32.mrf.mxu3  ;;  %523 = vst.msk [vmem:[%s769_s6 + $0x2c] sm:$0xf] %vm159_vm0, %v515_v62 }
 0x184   : > { %v505_v1 = vmax.f32 %v435_v0, 0.0 }
 0x186   : > { %v514_v2 = vpack.c.bf16 %v506_v63, %v505_v1 }
 0x188   : > { %522 = vst [vmem:[%s769_s6 + $0x24] sm:$0xff] %v514_v2 }
 0x189 PF: > { %s12_s9 = sadd.s32 1, %s636_s9  }
 0x18a   : > { %p9_p4 = scmp.ge.s32.totalorder %s12_s9, 4  }
 0x18c   :  { %11 = sbr.rel (!%p9_p4) target bundleno = 1 (0x1), region = 72 }

</bundles_post_ra>
